<compile_context>
chip_gen: v7x
topology: tpu7x:2x2x1
jax: 0.10.0
libtpu: 0.0.40
codegen_flags: <defaults>
</compile_context>

<pallas_src>
import functools

import jax
import jax.numpy as jnp
from jax.experimental import pallas as pl
from jax.experimental.pallas import tpu as pltpu


def _round_up(x, m):
    return ((x + m - 1) // m) * m


def mlp_kernel(x_ref, w1_ref, b1_ref, w2_ref, b2_ref, w3_ref, b3_ref, o_ref,
               *, compute_dtype):
    # In-kernel cast of the streamed input (x stays f32 in HBM; the VPU cast is
    # hidden under the DMA in this memory-bound regime).
    x = x_ref[...]
    if compute_dtype is not None:
        x = x.astype(compute_dtype)

    # Layer 1: Linear(input_dim -> hidden_dim) + ReLU.  MXU operands may be bf16,
    # accumulation is always f32 (preferred_element_type).
    h1 = jnp.dot(x, w1_ref[...], preferred_element_type=jnp.float32)
    h1 = jnp.maximum(h1 + b1_ref[...], 0.0)          # f32 elementwise (v5e-safe)
    # Dropout(0.2) -> identity in eval/inference mode.
    # TODO(synk): training-mode dropout (random mask + 1/(1-p) scaling) not implemented.

    # Layer 2: Linear(hidden_dim -> hidden_dim // 2) + ReLU
    h2 = jnp.dot(h1.astype(w2_ref.dtype), w2_ref[...],
                 preferred_element_type=jnp.float32)
    h2 = jnp.maximum(h2 + b2_ref[...], 0.0)

    # Layer 3: Linear(hidden_dim // 2 -> num_classes), raw logits out.
    # Output block is (bt, C) with C == full array width -> minimal HBM writeback.
    logits = jnp.dot(h2.astype(w3_ref.dtype), w3_ref[...],
                     preferred_element_type=jnp.float32)
    o_ref[...] = (logits + b3_ref[...]).astype(o_ref.dtype)


def mlp_forward(x, params, *, batch_tile=8192, compute_dtype=jnp.bfloat16):
    """Fused MLP forward pass with a Pallas TPU kernel.

    x: (B, input_dim) float32
    params: dict with w1 (D,H), b1 (1,H), w2 (H,H2), b2 (1,H2), w3 (H2,C), b3 (1,C)
    batch_tile: rows per grid step (rounded to a multiple of 8; clamped to B).
    compute_dtype: dtype for the matmul operands (None -> exact f32 path).
    """
    w1, b1, w2, b2, w3, b3 = (params[k] for k in ("w1", "b1", "w2", "b2", "w3", "b3"))
    B, D = x.shape
    H = w1.shape[1]
    H2 = w2.shape[1]
    C = w3.shape[1]

    # ---- batch tiling: multiple of 8 sublanes, clamped to the (padded) batch ----
    bt = min(_round_up(int(batch_tile), 8), _round_up(B, 8))
    bt = max(8, bt)
    grid = (pl.cdiv(B, bt),)   # Pallas masks the boundary tile; no jnp.pad of x.

    # ---- weights/biases: tiny, cast once in the wrapper, VMEM-resident ----
    if compute_dtype is not None:
        w1 = w1.astype(compute_dtype)
        w2 = w2.astype(compute_dtype)
        w3 = w3.astype(compute_dtype)
    b1 = b1.astype(jnp.float32)
    b2 = b2.astype(jnp.float32)
    b3 = b3.astype(jnp.float32)

    # Constant index_map -> whole tensor resident across all grid steps.
    # (pipeline_mode=pl.Buffered(1) would shave a few KB here; skipped as minor.)
    full = lambda shape: pl.BlockSpec(shape, lambda i: (0,) * len(shape))

    w_itemsize = jnp.dtype(w1.dtype).itemsize
    cost = pl.CostEstimate(
        flops=2 * B * (D * H + H * H2 + H2 * C),
        transcendentals=0,
        bytes_accessed=(
            B * D * 4                                   # stream x (f32 in HBM)
            + B * C * 4                                 # write logits (narrow)
            + (D * H + H * H2 + H2 * C) * w_itemsize    # weights (once)
            + (H + H2 + C) * 4                          # biases
        ),
    )

    out = pl.pallas_call(
        functools.partial(mlp_kernel, compute_dtype=compute_dtype),
        out_shape=jax.ShapeDtypeStruct((B, C), jnp.float32),
        grid_spec=pltpu.PrefetchScalarGridSpec(
            num_scalar_prefetch=0,
            grid=grid,
            in_specs=[
                pl.BlockSpec((bt, D), lambda i: (i, 0)),   # x: only streamed input
                full((D, H)), full((1, H)),
                full((H, H2)), full((1, H2)),
                full((H2, C)), full((1, C)),
            ],
            out_specs=pl.BlockSpec((bt, C), lambda i: (i, 0)),
        ),
        compiler_params=pltpu.CompilerParams(
            dimension_semantics=(pltpu.PARALLEL,),
        ),
        cost_estimate=cost,
    )(x, w1, b1, w2, b2, w3, b3)

    return out


def init_params(key, input_dim, hidden_dim=64, num_classes=3):
    """Deterministic synthetic parameter init (same shapes/bounds as nn.Linear)."""
    h2 = hidden_dim // 2
    ks = jax.random.split(key, 6)
    scale = lambda fan_in: 1.0 / jnp.sqrt(jnp.float32(fan_in))
    params = {
        "w1": jax.random.uniform(ks[0], (input_dim, hidden_dim), jnp.float32,
                                 -scale(input_dim), scale(input_dim)),
        "b1": jax.random.uniform(ks[1], (1, hidden_dim), jnp.float32,
                                 -scale(input_dim), scale(input_dim)),
        "w2": jax.random.uniform(ks[2], (hidden_dim, h2), jnp.float32,
                                 -scale(hidden_dim), scale(hidden_dim)),
        "b2": jax.random.uniform(ks[3], (1, h2), jnp.float32,
                                 -scale(hidden_dim), scale(hidden_dim)),
        "w3": jax.random.uniform(ks[4], (h2, num_classes), jnp.float32,
                                 -scale(h2), scale(h2)),
        "b3": jax.random.uniform(ks[5], (1, num_classes), jnp.float32,
                                 -scale(h2), scale(h2)),
    }
    return params


def mlp_reference(x, p):
    h1 = jnp.maximum(x @ p["w1"] + p["b1"], 0.0)
    h2 = jnp.maximum(h1 @ p["w2"] + p["b2"], 0.0)
    return h2 @ p["w3"] + p["b3"]


if __name__ == "__main__":
    key = jax.random.PRNGKey(0)
    k_x, k_p = jax.random.split(key)

    # Small shapes consistent with the module (perf conclusions apply at B >= 4K;
    # this is a correctness smoke test only).
    batch, input_dim, hidden_dim, num_classes = 8, 16, 64, 3
    x = jax.random.normal(k_x, (batch, input_dim), dtype=jnp.float32)
    params = init_params(k_p, input_dim, hidden_dim, num_classes)

    ref = mlp_reference(x, params)

    # 1) Exact f32 path (numerics identical to the PyTorch eval-mode forward).
    out_f32 = jax.block_until_ready(mlp_forward(x, params, compute_dtype=None))
    assert out_f32.shape == (batch, num_classes), out_f32.shape
    assert jnp.allclose(out_f32, ref, atol=1e-5, rtol=1e-5), \
        f"f32 max diff {jnp.max(jnp.abs(out_f32 - ref))}"

    # 2) Default perf path: bf16 matmul operands (cast in-kernel), f32 accumulation,
    #    narrow f32 output. Looser tolerance for the bf16 operand cast.
    out_bf16 = jax.block_until_ready(mlp_forward(x, params))
    assert out_bf16.shape == (batch, num_classes), out_bf16.shape
    assert jnp.allclose(out_bf16, ref, atol=5e-2, rtol=5e-2), \
        f"bf16 max diff {jnp.max(jnp.abs(out_bf16 - ref))}"

    # 3) Multi-tile path: force >1 grid step (boundary tile masked, parallel axis).
    batch_big = 200  # not a multiple of the tile -> exercises the masked last tile
    x_big = jax.random.normal(k_x, (batch_big, input_dim), dtype=jnp.float32)
    ref_big = mlp_reference(x_big, params)
    out_big = jax.block_until_ready(mlp_forward(x_big, params, batch_tile=64))
    assert out_big.shape == (batch_big, num_classes), out_big.shape
    assert jnp.allclose(out_big, ref_big, atol=5e-2, rtol=5e-2), \
        f"tiled max diff {jnp.max(jnp.abs(out_big - ref_big))}"

    print("KERNEL_OK")
</pallas_src>

<mosaic_0001>
module attributes {stable_mosaic.version = 11 : i64} {
  func.func @mlp_kernel(%arg0: i32, %arg1: memref<8x16xf32, #tpu.memory_space<vmem>>, %arg2: memref<16x64xf32, #tpu.memory_space<vmem>>, %arg3: memref<1x64xf32, #tpu.memory_space<vmem>>, %arg4: memref<64x32xf32, #tpu.memory_space<vmem>>, %arg5: memref<1x32xf32, #tpu.memory_space<vmem>>, %arg6: memref<32x3xf32, #tpu.memory_space<vmem>>, %arg7: memref<1x3xf32, #tpu.memory_space<vmem>>, %arg8: memref<8x3xf32, #tpu.memory_space<vmem>>) attributes {dimension_semantics = [#tpu.dimension_semantics<parallel>], iteration_bounds = array<i64: 1>, scalar_prefetch = 0 : i64, scratch_operands = 0 : i64, tpu.core_type = #tpu.core_type<tc>, window_params = [{transform_indices = @transform_0, window_bounds = array<i64: 8, 16>}, {pipeline_mode = #tpu.pipeline_mode<synchronous>, transform_indices = @transform_1, window_bounds = array<i64: 16, 64>}, {pipeline_mode = #tpu.pipeline_mode<synchronous>, transform_indices = @transform_2, window_bounds = array<i64: 1, 64>}, {pipeline_mode = #tpu.pipeline_mode<synchronous>, transform_indices = @transform_3, window_bounds = array<i64: 64, 32>}, {pipeline_mode = #tpu.pipeline_mode<synchronous>, transform_indices = @transform_4, window_bounds = array<i64: 1, 32>}, {pipeline_mode = #tpu.pipeline_mode<synchronous>, transform_indices = @transform_5, window_bounds = array<i64: 32, 3>}, {pipeline_mode = #tpu.pipeline_mode<synchronous>, transform_indices = @transform_6, window_bounds = array<i64: 1, 3>}, {transform_indices = @transform_7, window_bounds = array<i64: 8, 3>}]} {
    %c0 = arith.constant 0 : index
    %c0_0 = arith.constant 0 : index
    %0 = vector.load %arg1[%c0, %c0_0] : memref<8x16xf32, #tpu.memory_space<vmem>>, vector<8x16xf32>
    %c0_1 = arith.constant 0 : index
    %c0_2 = arith.constant 0 : index
    %1 = vector.load %arg2[%c0_1, %c0_2] : memref<16x64xf32, #tpu.memory_space<vmem>>, vector<16x64xf32>
    %cst = arith.constant dense<0.000000e+00> : vector<8x64xf32>
    %2 = tpu.matmul %0, %1, %cst {dimension_numbers = #tpu.dot_dimension_numbers<[1], [0], [0], [1], [0, 0, 1, 1], [], []>} : vector<8x16xf32>, vector<16x64xf32>, vector<8x64xf32> -> vector<8x64xf32>
    %c0_3 = arith.constant 0 : index
    %c0_4 = arith.constant 0 : index
    %3 = vector.load %arg3[%c0_3, %c0_4] : memref<1x64xf32, #tpu.memory_space<vmem>>, vector<1x64xf32>
    %4 = vector.broadcast %3 : vector<1x64xf32> to vector<8x64xf32>
    %5 = arith.addf %2, %4 : vector<8x64xf32>
    %cst_5 = arith.constant 0.000000e+00 : f32
    %6 = vector.broadcast %cst_5 : f32 to vector<8x64xf32>
    %7 = arith.maximumf %5, %6 : vector<8x64xf32>
    %c0_6 = arith.constant 0 : index
    %c0_7 = arith.constant 0 : index
    %8 = vector.load %arg4[%c0_6, %c0_7] : memref<64x32xf32, #tpu.memory_space<vmem>>, vector<64x32xf32>
    %cst_8 = arith.constant dense<0.000000e+00> : vector<8x32xf32>
    %9 = tpu.matmul %7, %8, %cst_8 {dimension_numbers = #tpu.dot_dimension_numbers<[1], [0], [0], [1], [0, 0, 1, 1], [], []>} : vector<8x64xf32>, vector<64x32xf32>, vector<8x32xf32> -> vector<8x32xf32>
    %c0_9 = arith.constant 0 : index
    %c0_10 = arith.constant 0 : index
    %10 = vector.load %arg5[%c0_9, %c0_10] : memref<1x32xf32, #tpu.memory_space<vmem>>, vector<1x32xf32>
    %11 = vector.broadcast %10 : vector<1x32xf32> to vector<8x32xf32>
    %12 = arith.addf %9, %11 : vector<8x32xf32>
    %cst_11 = arith.constant 0.000000e+00 : f32
    %13 = vector.broadcast %cst_11 : f32 to vector<8x32xf32>
    %14 = arith.maximumf %12, %13 : vector<8x32xf32>
    %c0_12 = arith.constant 0 : index
    %c0_13 = arith.constant 0 : index
    %15 = vector.load %arg6[%c0_12, %c0_13] : memref<32x3xf32, #tpu.memory_space<vmem>>, vector<32x3xf32>
    %cst_14 = arith.constant dense<0.000000e+00> : vector<8x3xf32>
    %16 = tpu.matmul %14, %15, %cst_14 {dimension_numbers = #tpu.dot_dimension_numbers<[1], [0], [0], [1], [0, 0, 1, 1], [], []>} : vector<8x32xf32>, vector<32x3xf32>, vector<8x3xf32> -> vector<8x3xf32>
    %c0_15 = arith.constant 0 : index
    %c0_16 = arith.constant 0 : index
    %17 = vector.load %arg7[%c0_15, %c0_16] : memref<1x3xf32, #tpu.memory_space<vmem>>, vector<1x3xf32>
    %18 = vector.broadcast %17 : vector<1x3xf32> to vector<8x3xf32>
    %19 = arith.addf %16, %18 : vector<8x3xf32>
    %c0_17 = arith.constant 0 : index
    %c0_18 = arith.constant 0 : index
    %20 = vector.load %arg8[%c0_17, %c0_18] : memref<8x3xf32, #tpu.memory_space<vmem>>, vector<8x3xf32>
    tpu.vector_store %arg8[%c0_17, %c0_18], %19 {strides = array<i32>} : memref<8x3xf32, #tpu.memory_space<vmem>>, vector<8x3xf32>,
    return
  }
  func.func @transform_0(%arg0: i32) -> (i32, i32) {
    %c0_i32 = arith.constant 0 : i32
    %c0_i32_0 = arith.constant 0 : i32
    return %arg0, %c0_i32 : i32, i32
  }
  func.func @transform_1(%arg0: i32) -> (i32, i32) {
    %c0_i32 = arith.constant 0 : i32
    %c0_i32_0 = arith.constant 0 : i32
    %c0_i32_1 = arith.constant 0 : i32
    return %c0_i32, %c0_i32_0 : i32, i32
  }
  func.func @transform_2(%arg0: i32) -> (i32, i32) {
    %c0_i32 = arith.constant 0 : i32
    %c0_i32_0 = arith.constant 0 : i32
    %c0_i32_1 = arith.constant 0 : i32
    return %c0_i32, %c0_i32_0 : i32, i32
  }
  func.func @transform_3(%arg0: i32) -> (i32, i32) {
    %c0_i32 = arith.constant 0 : i32
    %c0_i32_0 = arith.constant 0 : i32
    %c0_i32_1 = arith.constant 0 : i32
    return %c0_i32, %c0_i32_0 : i32, i32
  }
  func.func @transform_4(%arg0: i32) -> (i32, i32) {
    %c0_i32 = arith.constant 0 : i32
    %c0_i32_0 = arith.constant 0 : i32
    %c0_i32_1 = arith.constant 0 : i32
    return %c0_i32, %c0_i32_0 : i32, i32
  }
  func.func @transform_5(%arg0: i32) -> (i32, i32) {
    %c0_i32 = arith.constant 0 : i32
    %c0_i32_0 = arith.constant 0 : i32
    %c0_i32_1 = arith.constant 0 : i32
    return %c0_i32, %c0_i32_0 : i32, i32
  }
  func.func @transform_6(%arg0: i32) -> (i32, i32) {
    %c0_i32 = arith.constant 0 : i32
    %c0_i32_0 = arith.constant 0 : i32
    %c0_i32_1 = arith.constant 0 : i32
    return %c0_i32, %c0_i32_0 : i32, i32
  }
  func.func @transform_7(%arg0: i32) -> (i32, i32) {
    %c0_i32 = arith.constant 0 : i32
    %c0_i32_0 = arith.constant 0 : i32
    return %arg0, %c0_i32 : i32, i32
  }
}

</mosaic_0001>

<bundles_post_ra>
// kernel: tpu_custom_call.1
= control target key start
LH: loop header
LB: loop body
LE: loop exit
PB: predicated region body
PF: predicated region fallthrough
CT: control target
= control target key end

     0   :  { %v376_v0 = vmov 0.0|0.0   ;;  %vm377_vm0 = vmmov 0   ;;  %v378_v3 = vmov 0.0   ;;  %vm36_vm1 = vcmask 130048   ;;  %s479_s1 = inlined_call_operand.vmem [shape: f32[16,64], index: 1, kind: input, shape index: {}]   ;;  %s480_s3 = inlined_call_operand.vmem [shape: f32[64,32], index: 3, kind: input, shape index: {}]   ;;  %s481_s0 = inlined_call_operand.vmem [shape: f32[8,16], index: 0, kind: input, shape index: {}]   ;;  %s482_s5 = inlined_call_operand.vmem [shape: f32[32,3], index: 5, kind: input, shape index: {}]   ;;  %s483_s2 = inlined_call_operand.vmem [shape: f32[1,64], index: 2, kind: input, shape index: {}]   ;;  %s484_s4 = inlined_call_operand.vmem [shape: f32[1,32], index: 4, kind: input, shape index: {}]   ;;  %s485_s6 = inlined_call_operand.vmem [shape: f32[1,3], index: 6, kind: input, shape index: {}]   ;;  %s486_s7 = inlined_call_operand.vmem [shape: f32[8,3], index: 7, kind: output, shape index: {}]  }
   0x1   :  { %352 = vmatprep.subr.bf16.mxu0 %v376_v0  ;;  %v27_v1 = vld [vmem:[%s479_s1] sm:$0xff]  ;;  %v28_v2 = vld [vmem:[%s479_s1 + $0x8] sm:$0xff]  ;;  %319 = vmatprep.mubr.msk.f32.mxu0 %vm377_vm0, %v378_v3  ;;  %v113_v7 = vld [vmem:[%s480_s3 + $0x10] sm:$0xff]  ;;  %vm126_vm2 = vcmask 523264   ;;  %vm212_vm3 = vcmask 261120   ;;  %vm286_vm4 = vcmask 23552  }
   0x2   :  { %v353_v4 = vpack.c.bf16 %v28_v2, %v27_v1  ;;  %355 = vmatprep.subr.bf16.mxu1 %v376_v0  ;;  %v111_v5 = vld [vmem:[%s480_s3] sm:$0xff]  ;;  %v112_v6 = vld [vmem:[%s480_s3 + $0x8] sm:$0xff]  ;;  %338 = vmatprep.mubr.msk.f32.mxu1 %vm377_vm0, %v378_v3  ;;  %v114_v9 = vld [vmem:[%s480_s3 + $0x18] sm:$0xff] }
   0x3   :  { %v356_v8 = vpack.c.bf16 %v112_v6, %v111_v5  ;;  %v26_v10 = vld [vmem:[%s481_s0] sm:$0xff]  ;;  %v359_v11 = vpack.c.bf16 %v114_v9, %v113_v7  ;;  %v116_v13 = vld [vmem:[%s480_s3 + $0x28] sm:$0xff]  ;;  %v117_v15 = vld [vmem:[%s480_s3 + $0x30] sm:$0xff] }
   0x4   :  { %354 = vmatpush3.bf16.msra.mxu0 %v353_v4  ;;  %v115_v12 = vld [vmem:[%s480_s3 + $0x20] sm:$0xff]  ;;  %v118_v16 = vld [vmem:[%s480_s3 + $0x38] sm:$0xff]  ;;  %v202_v19 = vld [vmem:[%s482_s5 + $0x8] sm:$0xff] }
   0x5   :  { %357 = vmatpush3.bf16.msra.mxu1 %v356_v8  ;;  %367 = vmatprep.subr.bf16.mxu0 %v376_v0  ;;  %v362_v14 = vpack.c.bf16 %v116_v13, %v115_v12  ;;  %v365_v17 = vpack.c.bf16 %v118_v16, %v117_v15  ;;  %v201_v18 = vld [vmem:[%s482_s5] sm:$0xff]  ;;  %v203_v26 = vld [vmem:[%s482_s5 + $0x10] sm:$0xff]  ;;  %v204_v27 = vld [vmem:[%s482_s5 + $0x18] sm:$0xff] }
   0x6   :  { %358 = vmatprep.subr.bf16.mxu1 %v376_v0  ;;  %v368_v20 = vpack.c.bf16 %v202_v19, %v201_v18  ;;  %v292_v21 = vld [vmem:[%s483_s2] ss:$0 sm:$0xff]  ;;  %v371_v28 = vpack.c.bf16 %v204_v27, %v203_v26 }
   0x7   :  { %320 = vmatmul.mubr.msk.f32.vlgmr.msra.gmra.mrb[0].mxu0 %vm36_vm1, %v26_v10  ;;  %v294_v29 = vld [vmem:[%s484_s4] ss:$0 sm:$0xff] }
   0x8   :  { %349 = vmatprep.mubr.msk.f32.mxu0 %vm377_vm0, %v378_v3  ;;  %369 = vmatpush3.bf16.msra.mxu0 %v368_v20  ;;  %v296_v34 = vld [vmem:[%s485_s6] ss:$0 sm:$0xff] }
   0x9   :  { %360 = vmatpush3.bf16.msra.mxu1 %v359_v11  ;;  %370 = vmatprep.subr.bf16.mxu0 %v376_v0 }
   0xa   :  { %361 = vmatprep.subr.bf16.mxu1 %v376_v0 }
   0xc   :  { %372 = vmatpush3.bf16.msra.mxu0 %v371_v28 }
   0xd   :  { %363 = vmatpush3.bf16.msra.mxu1 %v362_v14 }
   0xe   :  { %364 = vmatprep.subr.bf16.mxu1 %v376_v0 }
  0x11   :  { %366 = vmatpush3.bf16.msra.mxu1 %v365_v17 }
  0xda   :  { %v106_v22 = vpop.f32.mrb[0].mxu0 }
  0xdb   :  { %v107_v23 = vadd.f32 %v292_v21, %v106_v22  ;;  %v321_v24 = vpop.f32.mrb[1].mxu0 }
  0xdd   :  { %v110_v25 = vmax.f32 %v107_v23, 0.0 }
  0xdf   :  { %339 = vmatmul.mubr.msk.f32.vlgmr.msra.gmra.mrb[0].mxu1 %vm126_vm2, %v110_v25 }
 0x1b2   :  { %v196_v30 = vpop.f32.mrb[0].mxu1 }
 0x1b3   :  { %v197_v31 = vadd.f32 %v294_v29, %v196_v30  ;;  %v340_v32 = vpop.f32.mrb[1].mxu1 }
 0x1b5   :  { %v200_v33 = vmax.f32 %v197_v31, 0.0 }
 0x1b7   :  { %350 = vmatmul.mubr.msk.f32.vlgmr.msra.gmra.mrb[2].mxu0 %vm212_vm3, %v200_v33 }
 0x28a   :  { %v282_v35 = vpop.f32.mrb[2].mxu0 }
 0x28b   :  { %v283_v36 = vadd.f32 %v296_v34, %v282_v35  ;;  %v351_v37 = vpop.f32.mrb[3].mxu0 }
 0x28d   :  { %287 = vst.msk [vmem:[%s486_s7] sm:$0xff] %vm286_vm4, %v283_v36 }

</bundles_post_ra>
